<compile_context>
chip_gen: v7x
topology: tpu7x:2x2x1
jax: 0.10.0
libtpu: 0.0.40
codegen_flags: <defaults>
</compile_context>

<pallas_src>
import functools

import jax
import jax.numpy as jnp
from jax.experimental import pallas as pl
from jax.experimental.pallas import tpu as pltpu


def _round_up(v, m):
    return (v + m - 1) // m * m


def _final_layer_kernel(x_ref, mod_ref, w_ref, b_ref, o_ref, *, eps):
    # x_ref:   (1, tq, H)      token tile of one batch element (f32 or bf16)
    # mod_ref: (1, 2, H)       row 0 = shift, row 1 = 1 + scale (f32)
    # w_ref:   (O_pad, H)      final linear weight, PyTorch layout, sublane-padded
    # b_ref:   (O_pad, 1)      final linear bias (f32)
    # o_ref:   (1, O_pad, tq)  transposed, lane-dense output tile
    x = x_ref[0].astype(jnp.float32)                       # (tq, H)

    # LayerNorm (elementwise_affine=False), one-pass statistics in f32.
    m1 = jnp.mean(x, axis=-1, keepdims=True)
    m2 = jnp.mean(x * x, axis=-1, keepdims=True)
    var = jnp.maximum(m2 - m1 * m1, 0.0)                   # guard tiny negatives
    xn = (x - m1) * jax.lax.rsqrt(var + eps)

    # modulate: x * (1 + scale) + shift   (broadcast (1, H) over (tq, H))
    mod = mod_ref[0]                                       # (2, H) f32
    xm = xn * mod[1:2, :] + mod[0:1, :]                    # (tq, H) f32

    # Transposed final linear on the MXU:  (O_pad, H) x (tq, H)^T -> (O_pad, tq)
    # bf16 (or f32) operands, f32 accumulation; token axis is the lane-dense
    # MXU N dimension (fills the 256-wide MXU on v6e/v7x).
    out = jax.lax.dot_general(
        w_ref[...], xm.astype(w_ref.dtype),
        dimension_numbers=(((1,), (1,)), ((), ())),
        preferred_element_type=jnp.float32)                # (O_pad, tq)
    o_ref[0] = (out + b_ref[...]).astype(o_ref.dtype)


def prepare_final_layer_params(params, *, matmul_dtype=jnp.bfloat16):
    """One-time parameter preparation (sublane-pad / cast).

    params (PyTorch layout):
        w_ada: (2H, H), b_ada: (2H,)   -- adaLN_modulation[1]
        w_lin: (O, H),  b_lin: (O,)    -- self.linear
    """
    O, _H = params["w_lin"].shape
    O_pad = _round_up(O, 16)                               # sublane pad only
    w_lin_p = jnp.pad(params["w_lin"].astype(matmul_dtype),
                      ((0, O_pad - O), (0, 0)))            # (O_pad, H)
    b_lin_p = jnp.pad(params["b_lin"].astype(jnp.float32),
                      (0, O_pad - O)).reshape(O_pad, 1)    # (O_pad, 1)
    return {
        "w_ada": params["w_ada"].astype(jnp.float32),      # (2H, H)
        "b_ada": params["b_ada"].astype(jnp.float32),      # (2H,)
        "w_lin_p": w_lin_p,
        "b_lin_p": b_lin_p,
        "out_features": O,
    }


def final_layer_forward(x, c, prepared, *, eps=1e-6, token_tile=512):
    """
    x: (N, T, H)  fp32 or bf16 (bf16 recommended: halves the dominant HBM read)
    c: (N, H); prepared = prepare_final_layer_params(...)
    returns: (N, T, O) in x.dtype
    """
    N, T, H = x.shape
    O = prepared["out_features"]
    w = prepared["w_lin_p"]                      # (O_pad, H)
    b = prepared["b_lin_p"]                      # (O_pad, 1)
    O_pad = w.shape[0]

    # --- adaLN path hoisted out of the kernel: tiny (N,H)@(H,2H) matmul.
    c32 = c.astype(jnp.float32)
    silu = c32 * jax.nn.sigmoid(c32)
    ada = jax.lax.dot_general(
        silu, prepared["w_ada"],
        dimension_numbers=(((1,), (1,)), ((), ())),
        preferred_element_type=jnp.float32) + prepared["b_ada"]          # (N, 2H)
    shift, scale = jnp.split(ada, 2, axis=-1)
    mod = jnp.stack([shift, 1.0 + scale], axis=1).astype(jnp.float32)    # (N, 2, H)

    # --- token tiling: lane-dense output stores (tq multiple of 128 when
    #     tiled), bounded VMEM, per-step overhead amortized, both TCs busy.
    max_tile = max(128, (int(token_tile) // 128) * 128)
    if T <= max_tile:
        if N == 1 and T >= 256:
            tq = _round_up((T + 1) // 2, 128)    # split tokens across megacore TCs
        else:
            tq = T
    else:
        tq = max_tile
    T_pad = _round_up(T, tq)
    if T_pad != T:
        # Padded rows are zeros: LN sees var=0 -> rsqrt(eps), stays finite,
        # and the rows are sliced off below. Intentional; no mask needed.
        x = jnp.pad(x, ((0, 0), (0, T_pad - T), (0, 0)))

    kernel = functools.partial(_final_layer_kernel, eps=eps)
    const_buf = pl.Buffered(1)                   # grid-invariant: single buffer

    out_t = pl.pallas_call(
        kernel,
        out_shape=jax.ShapeDtypeStruct((N, O_pad, T_pad), x.dtype),
        grid_spec=pltpu.PrefetchScalarGridSpec(
            num_scalar_prefetch=0,
            grid=(N, T_pad // tq),
            in_specs=[
                pl.BlockSpec((1, tq, H), lambda bi, ti: (bi, ti, 0)),     # x
                pl.BlockSpec((1, 2, H), lambda bi, ti: (bi, 0, 0)),       # shift/1+scale
                pl.BlockSpec((O_pad, H), lambda bi, ti: (0, 0),
                             pipeline_mode=const_buf),                    # w_lin
                pl.BlockSpec((O_pad, 1), lambda bi, ti: (0, 0),
                             pipeline_mode=const_buf),                    # b_lin
            ],
            out_specs=pl.BlockSpec((1, O_pad, tq), lambda bi, ti: (bi, 0, ti)),
        ),
        compiler_params=pltpu.CompilerParams(
            dimension_semantics=("parallel", "parallel"),
            # Safe on v5e/v6e (128 MiB physical) and v7x (64 MiB physical);
            # leaves headroom above the 32 MiB default scoped limit.
            vmem_limit_bytes=48 * 1024 * 1024),
    )(x, mod, w, b)

    # (N, O_pad, T_pad) -> (N, T, O). This small transpose/slice is ~8x less
    # HBM traffic than the old lane-padded O_pad=128 output + slice pass; a
    # downstream unpatchify reshape can absorb the (N, O, T) layout entirely.
    return jnp.swapaxes(out_t, 1, 2)[:, :T, :O]


def final_layer_reference(x, c, params, *, eps=1e-6):
    """Pure-JAX f32 reference mirroring the PyTorch forward."""
    silu = c * jax.nn.sigmoid(c)
    ada = silu @ params["w_ada"].T + params["b_ada"]            # (N, 2H)
    shift, scale = jnp.split(ada, 2, axis=1)
    mean = jnp.mean(x, axis=-1, keepdims=True)
    var = jnp.mean((x - mean) ** 2, axis=-1, keepdims=True)
    xn = (x - mean) / jnp.sqrt(var + eps)
    xm = xn * (1.0 + scale[:, None, :]) + shift[:, None, :]
    return xm @ params["w_lin"].T + params["b_lin"]


if __name__ == "__main__":
    # Small shapes consistent with FinalLayer(hidden_size, patch_size, out_channels)
    N, T = 2, 8
    hidden_size, patch_size, out_channels = 32, 2, 4
    O = patch_size * patch_size * out_channels   # 16

    key = jax.random.PRNGKey(0)
    k_x, k_c, k_wa, k_ba, k_wl, k_bl = jax.random.split(key, 6)

    x = jax.random.normal(k_x, (N, T, hidden_size), dtype=jnp.float32)
    c = jax.random.normal(k_c, (N, hidden_size), dtype=jnp.float32)

    params = {
        "w_ada": 0.05 * jax.random.normal(k_wa, (2 * hidden_size, hidden_size), jnp.float32),
        "b_ada": 0.01 * jax.random.normal(k_ba, (2 * hidden_size,), jnp.float32),
        "w_lin": 0.05 * jax.random.normal(k_wl, (O, hidden_size), jnp.float32),
        "b_lin": 0.01 * jax.random.normal(k_bl, (O,), jnp.float32),
    }

    prepared = prepare_final_layer_params(params, matmul_dtype=jnp.bfloat16)

    out = jax.block_until_ready(final_layer_forward(x, c, prepared))
    ref = final_layer_reference(x, c, params)
    assert out.shape == (N, T, O), out.shape
    # Tolerance accounts for bf16 matmul operands (f32 accumulation / LayerNorm).
    assert jnp.allclose(out, ref, atol=3e-2, rtol=3e-2), \
        f"max err {jnp.max(jnp.abs(out - ref))}"

    # bf16-x path (preferred HBM dtype for the dominant read stream): smoke test.
    out_bf16 = jax.block_until_ready(final_layer_forward(x.astype(jnp.bfloat16), c, prepared))
    assert out_bf16.shape == (N, T, O), out_bf16.shape
    assert bool(jnp.all(jnp.isfinite(out_bf16.astype(jnp.float32))))

    print("KERNEL_OK")
</pallas_src>

<mosaic_0001>
module attributes {stable_mosaic.version = 11 : i64} {
  func.func @_final_layer_kernel(%arg0: i32, %arg1: i32, %arg2: memref<1x8x32xf32, #tpu.memory_space<vmem>>, %arg3: memref<1x2x32xf32, #tpu.memory_space<vmem>>, %arg4: memref<16x32xbf16, #tpu.memory_space<vmem>>, %arg5: memref<16x1xf32, #tpu.memory_space<vmem>>, %arg6: memref<1x16x8xf32, #tpu.memory_space<vmem>>) attributes {dimension_semantics = [#tpu.dimension_semantics<parallel>, #tpu.dimension_semantics<parallel>], iteration_bounds = array<i64: 2, 1>, scalar_prefetch = 0 : i64, scratch_operands = 0 : i64, tpu.core_type = #tpu.core_type<tc>, window_params = [{transform_indices = @transform_0, window_bounds = array<i64: 1, 8, 32>}, {transform_indices = @transform_1, window_bounds = array<i64: 1, 2, 32>}, {pipeline_mode = #tpu.pipeline_mode<synchronous>, transform_indices = @transform_2, window_bounds = array<i64: 16, 32>}, {pipeline_mode = #tpu.pipeline_mode<synchronous>, transform_indices = @transform_3, window_bounds = array<i64: 16, 1>}, {transform_indices = @transform_4, window_bounds = array<i64: 1, 16, 8>}]} {
    %c0 = arith.constant 0 : index
    %c0_0 = arith.constant 0 : index
    %c0_1 = arith.constant 0 : index
    %0 = vector.load %arg2[%c0, %c0_0, %c0_1] : memref<1x8x32xf32, #tpu.memory_space<vmem>>, vector<1x8x32xf32>
    %1 = vector.shape_cast %0 : vector<1x8x32xf32> to vector<8x32xf32>
    %cst = arith.constant dense<0.000000e+00> : vector<8xf32>
    %2 = vector.multi_reduction <add>, %1, %cst [1] : vector<8x32xf32> to vector<8xf32>
    %3 = vector.shape_cast %2 : vector<8xf32> to vector<8x1xf32>
    %cst_2 = arith.constant 3.200000e+01 : f32
    %4 = vector.broadcast %cst_2 : f32 to vector<8x1xf32>
    %5 = arith.divf %3, %4 : vector<8x1xf32>
    %6 = arith.mulf %1, %1 : vector<8x32xf32>
    %cst_3 = arith.constant dense<0.000000e+00> : vector<8xf32>
    %7 = vector.multi_reduction <add>, %6, %cst_3 [1] : vector<8x32xf32> to vector<8xf32>
    %8 = vector.shape_cast %7 : vector<8xf32> to vector<8x1xf32>
    %cst_4 = arith.constant 3.200000e+01 : f32
    %9 = vector.broadcast %cst_4 : f32 to vector<8x1xf32>
    %10 = arith.divf %8, %9 : vector<8x1xf32>
    %11 = arith.mulf %5, %5 : vector<8x1xf32>
    %12 = arith.subf %10, %11 : vector<8x1xf32>
    %cst_5 = arith.constant 0.000000e+00 : f32
    %13 = vector.broadcast %cst_5 : f32 to vector<8x1xf32>
    %14 = arith.maximumf %12, %13 : vector<8x1xf32>
    %15 = vector.broadcast %5 : vector<8x1xf32> to vector<8x32xf32>
    %16 = arith.subf %1, %15 : vector<8x32xf32>
    %cst_6 = arith.constant 9.99999997E-7 : f32
    %17 = vector.broadcast %cst_6 : f32 to vector<8x1xf32>
    %18 = arith.addf %14, %17 : vector<8x1xf32>
    %19 = math.rsqrt %18 : vector<8x1xf32>
    %20 = vector.broadcast %19 : vector<8x1xf32> to vector<8x32xf32>
    %21 = arith.mulf %16, %20 : vector<8x32xf32>
    %c0_7 = arith.constant 0 : index
    %c0_8 = arith.constant 0 : index
    %c0_9 = arith.constant 0 : index
    %22 = vector.load %arg3[%c0_7, %c0_8, %c0_9] : memref<1x2x32xf32, #tpu.memory_space<vmem>>, vector<1x2x32xf32>
    %23 = vector.shape_cast %22 : vector<1x2x32xf32> to vector<2x32xf32>
    %24 = vector.extract_strided_slice %23 {offsets = [1, 0], sizes = [1, 32], strides = [1, 1]} : vector<2x32xf32> to vector<1x32xf32>
    %25 = vector.broadcast %24 : vector<1x32xf32> to vector<8x32xf32>
    %26 = arith.mulf %21, %25 : vector<8x32xf32>
    %27 = vector.extract_strided_slice %23 {offsets = [0, 0], sizes = [1, 32], strides = [1, 1]} : vector<2x32xf32> to vector<1x32xf32>
    %28 = vector.broadcast %27 : vector<1x32xf32> to vector<8x32xf32>
    %29 = arith.addf %26, %28 : vector<8x32xf32>
    %c0_10 = arith.constant 0 : index
    %c0_11 = arith.constant 0 : index
    %30 = vector.load %arg4[%c0_10, %c0_11] : memref<16x32xbf16, #tpu.memory_space<vmem>>, vector<16x32xbf16>
    %31 = arith.truncf %29 : vector<8x32xf32> to vector<8x32xbf16>
    %cst_12 = arith.constant dense<0.000000e+00> : vector<16x8xf32>
    %32 = tpu.matmul %30, %31, %cst_12 {dimension_numbers = #tpu.dot_dimension_numbers<[1], [1], [0], [0], [0, 0, 1, 0], [], []>} : vector<16x32xbf16>, vector<8x32xbf16>, vector<16x8xf32> -> vector<16x8xf32>
    %c0_13 = arith.constant 0 : index
    %c0_14 = arith.constant 0 : index
    %33 = vector.load %arg5[%c0_13, %c0_14] : memref<16x1xf32, #tpu.memory_space<vmem>>, vector<16x1xf32>
    %34 = vector.broadcast %33 : vector<16x1xf32> to vector<16x8xf32>
    %35 = arith.addf %32, %34 : vector<16x8xf32>
    %c0_15 = arith.constant 0 : index
    %c0_16 = arith.constant 0 : index
    %c0_17 = arith.constant 0 : index
    %36 = vector.load %arg6[%c0_15, %c0_16, %c0_17] : memref<1x16x8xf32, #tpu.memory_space<vmem>>, vector<1x16x8xf32>
    %37 = vector.shape_cast %36 : vector<1x16x8xf32> to vector<16x8xf32>
    %38 = vector.shape_cast %35 : vector<16x8xf32> to vector<1x16x8xf32>
    tpu.vector_store %arg6[%c0_15, %c0_16, %c0_17], %38 {strides = array<i32>} : memref<1x16x8xf32, #tpu.memory_space<vmem>>, vector<1x16x8xf32>,
    return
  }
  func.func @transform_0(%arg0: i32, %arg1: i32) -> (i32, i32, i32) {
    %c0_i32 = arith.constant 0 : i32
    %c0_i32_0 = arith.constant 0 : i32
    return %arg0, %arg1, %c0_i32 : i32, i32, i32
  }
  func.func @transform_1(%arg0: i32, %arg1: i32) -> (i32, i32, i32) {
    %c0_i32 = arith.constant 0 : i32
    %c0_i32_0 = arith.constant 0 : i32
    %c0_i32_1 = arith.constant 0 : i32
    return %arg0, %c0_i32, %c0_i32_0 : i32, i32, i32
  }
  func.func @transform_2(%arg0: i32, %arg1: i32) -> (i32, i32) {
    %c0_i32 = arith.constant 0 : i32
    %c0_i32_0 = arith.constant 0 : i32
    %c0_i32_1 = arith.constant 0 : i32
    return %c0_i32, %c0_i32_0 : i32, i32
  }
  func.func @transform_3(%arg0: i32, %arg1: i32) -> (i32, i32) {
    %c0_i32 = arith.constant 0 : i32
    %c0_i32_0 = arith.constant 0 : i32
    %c0_i32_1 = arith.constant 0 : i32
    return %c0_i32, %c0_i32_0 : i32, i32
  }
  func.func @transform_4(%arg0: i32, %arg1: i32) -> (i32, i32, i32) {
    %c0_i32 = arith.constant 0 : i32
    %c0_i32_0 = arith.constant 0 : i32
    return %arg0, %c0_i32, %arg1 : i32, i32, i32
  }
}

</mosaic_0001>

<bundles_post_ra>
// kernel: tpu_custom_call.1
= control target key start
LH: loop header
LB: loop body
LE: loop exit
PB: predicated region body
PF: predicated region fallthrough
CT: control target
= control target key end

     0   :  { %9 = vsyncpa [#allocation3], 0  ;;  %s816_s0 = inlined_call_operand.vmem [shape: f32[2,8,32], index: 0, kind: input, shape index: {}]   ;;  %s817_s1 = inlined_call_operand.hbm [shape: f32[2,2,32], index: 1, kind: input, shape index: {}]   ;;  %s818_s2 = inlined_call_operand.vmem [shape: bf16[16,32], index: 2, kind: input, shape index: {}]   ;;  %s819_s3 = inlined_call_operand.vmem [shape: f32[16,1], index: 3, kind: input, shape index: {}]   ;;  %s820_s4 = inlined_call_operand.vmem [shape: f32[2,16,8], index: 4, kind: output, shape index: {}]  }
   0x1   :  { %11 = vsyncpa [#allocation3 + $0x1], 0  ;;  %s666_s15 = smov 0   ;;  %s668_s16 = smov 0  }
   0x2   :  { %s670_s17 = smov 0   ;;  %s672_s18 = smov 0  }
   0x3   :  { %s674_s19 = smov 0   ;;  %s676_s20 = smov 0  }
   0x4 LB: > { %s468_s21 = sadd.s32 4294967295, %s635_s20   ;;  %s29_s22 = sadd.s32 1, %s631_s19  ;;  %s635_s20 = sphi %s676_s20, %s17_s20   ;;  %s631_s19 = sphi %s674_s19, %s830_s19   ;;  %s627_s18 = sphi %s672_s18, %s829_s18   ;;  %s623_s17 = sphi %s670_s17, %s828_s17   ;;  %s619_s16 = sphi %s668_s16, %s827_s16   ;;  %s615_s15 = sphi %s666_s15, %s826_s15  }
   0x5   : > { %p31_p0 = scmp.ge.s32.totalorder %s29_s22, 2  ;;  %s64_s23 = sadd.s32 1, %s623_s17 }
   0x6   : > { %p71_p1 = scmp.ne.s32.totalorder %s623_s17, %s619_s16  ;;  %p72_p2 = scmp.eq.s32.totalorder %s635_s20, 0 }
   0x7   : > { %s832_s22 = smov (%p31_p0, %s29_s22), 0  ;;  %p77_p4 = scmp.ne.s32.totalorder %s619_s16, %s615_s15 }
   0x8   : > { %p702_p3 = por %p72_p2, %p71_p1  ;;  %s61_s25 = ssub.s32 %s631_s19, %s832_s22 }
   0x9   : > { %p78_p5 = scmp.eq.s32.totalorder %s468_s21, 0  ;;  %p62_p6 = scmp.eq.s32.totalorder %s61_s25, 0 }
   0xa   : > { %p498_p8 = scmp.lt.s32.totalorder %s635_s20, 2  ;;  %s187_s28 = sand.u32 1, %s623_s17  }
   0xb   : > { %p709_p7 = por %p78_p5, %p77_p4  ;;  %s473_s29 = sshll.u32 %s631_s19, 5 }
   0xc   : > { %s715_s27 = scalar_select %p62_p6, %s623_s17, %s64_s23  }
   0xd   : > { %s472_s30 = sshll.u32 %s187_s28, 1  ;;  %s722_s7 = scalar_lea.hbm %s817_s1, %s473_s29 }
   0xe   : > { %s191_s8 = scalar_lea.vmem [#allocation2], %s472_s30  ;;  %p726_p9 = pnand %p498_p8, %p702_p3 }
   0xf   : > { %s198_s9 = sshll.u32 %s191_s8, 4  ;;  %s188_s11 = scalar_lea.sflag [#allocation3], %s187_s28  ;;  %s730_s9 = int_to_ptr.vmem [resolvable:$true] %s198_s9 }
  0x10   : > { %s555_s12 = scalar_lea.hbm %s722_s7, 32  ;;  %p557_p13 = pneg %p726_p9 }
  0x11   : > { %p556_p12 = scmp.ne.s32.totalorder %s722_s7, %s555_s12  ;;  %s560_s15 = scalar_lea.hbm %s817_s1, 64 }
  0x12   : > { %p561_p2 = scmp.lt.u32.totalorder %s722_s7, %s817_s1  ;;  %p562_p3 = scmp.lt.u32.totalorder %s560_s15, %s555_s12 }
  0x13   : > { %p558_p0 = pnand %p557_p13, %p556_p12  ;;  %p564_p5 = scmp.lt.u32.totalorder %s555_s12, %s722_s7 }
  0x14   : > { %p563_p4 = por %p562_p3, %p561_p2 }
  0x15   : > { %p559_p1 = pneg %p558_p0 }
  0x16   : > { %p565_p6 = por %p564_p5, %p563_p4 }
  0x18   : > { %p566_p8 = pnand %p565_p6, %p559_p1 }
  0x1a   : > { %569 = shalt.err (!%p566_p8)
}
  0x1b   : > { %s570_s24 = scalar_lea.vmem %s730_s9, 32  ;;  %s637_s25 = smov [#allocation2]  }
  0x1c   : > { %p571_p12 = scmp.ne.s32.totalorder %s730_s9, %s570_s24  ;;  %s575_s28 = sshll.u32 %s637_s25, 4  ;;  %s576_s28 = int_to_ptr.vmem [resolvable:$false] %s575_s28 }
  0x1d   : > { %s577_s29 = scalar_lea.vmem %s576_s28, 64  ;;  %p578_p11 = scmp.lt.s32.totalorder %s730_s9, %s576_s28 }
  0x1e   : > { %p573_p0 = pnand %p571_p12, %p557_p13  ;;  %p579_p2 = scmp.lt.s32.totalorder %s577_s29, %s570_s24 }
  0x20   : > { %p574_p10 = pneg %p573_p0  ;;  %p580_p3 = por %p579_p2, %p578_p11 }
  0x22   : > { %p581_p4 = pnand %p580_p3, %p574_p10 }
  0x24   : > { %584 = shalt.err (!%p581_p4)
}
  0x25   : > { %497 = dma.hbm_to_vmem [thread:$0]  (!%p726_p9), %s722_s7, 32, %s730_s9, %s188_s11  }
  0x26   : > { %p824_p1 = scmp.lt.s32.totalorder %s635_s20, 3  ;;  %p825_p5 = scmp.ge.s32.totalorder %s635_s20, 1 }
  0x28   : > { %p204_p13 = pnand %p825_p5, %p824_p1 }
  0x29   : > { %s209_s30 = sand.u32 (!%p204_p13), 1, %s619_s16  }
  0x2a   : > { %207 = sbr.rel (%p204_p13) target bundleno = 455 (0x1c7), region = 36  ;;  %s764_s5 = sshll.u32 (!%p204_p13), %s209_s30, 1 }
  0x2b   : > { %s210_s6 = scalar_lea.sflag (!%p204_p13), [#allocation3], %s209_s30  ;;  %s213_s8 = scalar_lea.vmem (!%p204_p13), [#allocation2], %s764_s5 }
  0x31   : > { %610 = dma.done.wait (%p709_p7), %s210_s6, 32  }
  0x32   : > { %612 = vsyncadd (%p709_p7), %s210_s6, 4294967264  ;;  %p248_p9 = scmp.lt.s32.totalorder %s627_s18, 1  ;;  %vm265_vm0 = vcmask 261120   ;;  %v638_v4 = vmov 0.0   ;;  %vm639_vm1 = vmmov 0   ;;  %v297_v5 = vld [vmem:[%s819_s3] sm:$0xff]  ;;  %v284_v15 = vlaneseq }
  0x33   : > { %486 = vmatprep.subr.bf16.mxu0 %v638_v4  ;;  %488 = vmatprep.mubr.msk.bf16.mxu0 %vm639_vm1, %v638_v4  ;;  %v640_v6 = vmov 0   ;;  %v298_v7 = vld [vmem:[%s819_s3 + $0x8] sm:$0xff]  ;;  %v283_v19 = vld [vmem:[%s213_s8] sm:$0x3]  ;;  %vm361_vm2 = vcmask 64512  }
  0x34   : > { %s834_s18 = smov (!%p248_p9, %s627_s18), 1  ;;  %550 = vset.pattern.permute.xlu1 %v640_v6  ;;  %551 = vset.pattern.permute.xlu0 %v640_v6  ;;  %v285_v17 = vshrl.u32 %v284_v15, 7  ;;  %v552_v30 = vld [vmem:[%s818_s2] sm:$0xff]  }
  0x35   : > { %s476_s7 = sshll.u32 %s834_s18, 3  ;;  %301 = vperm.xlu1 %550, %v297_v5   ;;  %s483_s23 = sshll.u32 %s834_s18, 4 }
  0x36   : > { %s254_s11 = scalar_lea.vmem %s816_s0, %s476_s7  ;;  %v286_v18 = vsub.s32 1, %v285_v17  ;;  %v291_v20 = vsub.s32 0, %v285_v17  ;;  %s262_s28 = scalar_lea.vmem %s820_s4, %s483_s23 }
  0x37   : > { %v264_v0 = vld [vmem:[%s254_s11] sm:$0xff] }
  0x38   : > { %v266_v1 = vsel %vm265_vm0, %v264_v0, 0.0  ;;  %v271_v2 = vmul.f32 %v264_v0, %v264_v0  ;;  %v287_v22 = vrot.slane %v283_v19, %v286_v18  ;;  %v292_v25 = vrot.slane %v283_v19, %v291_v20 }
  0x39   : > { %267 = vadd.xlane.f32.xlu0 %v266_v1  ;;  %306 = vperm.xlu1 %550, %v298_v7  }
  0x3a   : > { %v272_v3 = vsel %vm265_vm0, %v271_v2, 0.0 }
  0x3d   : > { %273 = vadd.xlane.f32.xlu0 %v272_v3 }
  0xb4   : > { %v302_v31 = vpop.permute.xlu1 %301 }
  0xb8   : > { %v307_v35 = vpop.permute.xlu1 %306 }
  0xc6   : > { %v268_v8 = vpop.xlane.xlu0 %267 }
  0xc7   : > { %v270_v9 = vmul.f32 0.03125, %v268_v8 }
  0xc9   : > { %v276_v11 = vmul.f32 %v270_v9, %v270_v9  ;;  %v279_v21 = vsub.f32 %v264_v0, %v270_v9 }
  0xca   : > { %v274_v10 = vpop.xlane.xlu0 %273 }
  0xcb   : > { %v275_v12 = vmul.f32 0.03125, %v274_v10 }
  0xcd   : > { %v277_v13 = vsub.f32 %v275_v12, %v276_v11 }
  0xcf   : > { %v278_v14 = vmax.f32 %v277_v13, 0.0 }
  0xd1   : > { %v280_v16 = vadd.f32 1e-06, %v278_v14 }
  0xd3   : > { %553 = vrsqrt.f32 %v280_v16 }
  0xdd   : > { %v554_v23 = vpop.eup %553 }
  0xde   : > { %v282_v24 = vmul.f32 %v554_v23, %v279_v21 }
  0xe0   : > { %v288_v26 = vmul.f32 %v287_v22, %v282_v24 }
  0xe2   : > { %v293_v27 = vadd.f32 %v292_v25, %v288_v26 }
  0xe4   : > { %v296_v28 = vpack.c.bf16 %v293_v27, %v293_v27 }
  0xe6   : > { %v318_v29 = vsel %vm265_vm0, %v296_v28, 0 }
  0xe7   : > { %487 = vmatpush3.bf16.xpose.msra.mxu0 %v318_v29 }
  0xee   : > { %489 = vmatmul.mubr.msk.bf16.vlgmr.msra.gmra.mrb[0].mxu0 %vm265_vm0, %v552_v30 }
 0x1c1   : > { %v354_v32 = vpop.f32.mrb[0].mxu0 }
 0x1c2   : > { %v355_v33 = vadd.f32 %v354_v32, %v302_v31  ;;  %v490_v34 = vpop.f32.mrb[1].mxu0 }
 0x1c3   : > { %v357_v36 = vpop.f32.mrb[2].mxu0 }
 0x1c4   : > { %362 = vst.msk [vmem:[%s262_s28] sm:$0xff] %vm361_vm2, %v355_v33  ;;  %v358_v37 = vadd.f32 %v357_v36, %v307_v35  ;;  %v491_v38 = vpop.f32.mrb[3].mxu0 }
 0x1c6   : > { %363 = vst.msk [vmem:[%s262_s28 + $0x8] sm:$0xff] %vm361_vm2, %v358_v37 }
 0x1c7 PF: > { %s17_s20 = sadd.s32 1, %s635_s20   ;;  %s826_s15 = smov %s619_s16 }
 0x1c8   : > { %p14_p7 = scmp.ge.s32.totalorder %s17_s20, 4   ;;  %s827_s16 = smov %s623_s17 }
 0x1c9   : > { %s828_s17 = smov %s715_s27  ;;  %s829_s18 = smov %s631_s19 }
 0x1ca   : > { %s830_s19 = smov %s832_s22  ;;  %16 = sbr.rel (!%p14_p7) target bundleno = 4 (0x4), region = 79 }
 0x1d1   :  { %391 = vsyncpa [#allocation3], 1 }
 0x1d2   :  { %393 = vsyncpa [#allocation3 + $0x1], 1 }

</bundles_post_ra>
